<compile_context>
chip_gen: v7x
topology: tpu7x:2x2x1
jax: 0.10.0
libtpu: 0.0.40
codegen_flags: <defaults>
</compile_context>

<pallas_src>
import math

import jax
import jax.numpy as jnp
from jax.experimental import pallas as pl
from jax.experimental.pallas import tpu as pltpu


def affine_kernel(x_ref, g_ref, b_ref, o_ref):
    # x_ref / o_ref: (TILE_R, TILE_D) tile; g_ref / b_ref: (1, TILE_D),
    # broadcast along the sublane axis by the VPU (cheap). Explicit cast keeps
    # mixed-dtype lowering clean.
    o_ref[...] = (x_ref[...] * g_ref[...] + b_ref[...]).astype(o_ref.dtype)


def _round_up(x, m):
    return ((x + m - 1) // m) * m


def affine(x, g, b, *, max_tile_bytes=8 * 1024 * 1024,
           vmem_limit_bytes=48 * 1024 * 1024):
    """x: (B, N, D); g, b: (1, 1, D) (or anything reshapable to (1, D)).

    Returns x * g + b with the same shape/dtype as x.
    """
    B, N, D = x.shape
    assert g.shape[-1] == D and b.shape[-1] == D

    rows = B * N
    itemsize = jnp.dtype(x.dtype).itemsize
    sublane = max(8, 32 // max(itemsize, 1))  # 8 f32, 16 bf16, 32 int8

    # ---- lane folding: make the lane (last) axis a multiple of 128 --------
    # If D is not lane-dense, fold k rows into the lane axis so stores are
    # unmasked `vst` instead of masked partial stores. Pure layout plumbing:
    # every logical row still sees the same (g, b) because g/b are tiled k
    # times along the folded lane axis.
    fold = 1
    if D % 128 != 0:
        k0 = 128 // math.gcd(D, 128)
        if rows % k0 == 0:
            fold = k0
    rows_eff = rows // fold
    d_eff = D * fold

    x2 = x.reshape(rows_eff, d_eff)  # metadata-only reshape (contiguous)
    # Cast params to the activation dtype (no-op for f32 activations; for bf16
    # activations this keeps VALU at full rate -- tiny numerics delta only).
    g2 = jnp.tile(jnp.asarray(g).reshape(1, D).astype(x.dtype), (1, fold))
    b2 = jnp.tile(jnp.asarray(b).reshape(1, D).astype(x.dtype), (1, fold))

    # ---- tile-size selection ----------------------------------------------
    # Tile the lane axis only when even a minimal-height (sublane) row tile
    # would blow the byte budget (very large D); requires d_eff % 128 == 0.
    if d_eff % 128 == 0 and sublane * d_eff * itemsize > max_tile_bytes:
        tile_d = max(128, (max_tile_bytes // (sublane * itemsize)) // 128 * 128)
        tile_d = min(tile_d, d_eff)
    else:
        tile_d = d_eff
    d_blocks = pl.cdiv(d_eff, tile_d)

    # Row tile: as big as the byte budget allows (no arbitrary row cap),
    # aligned to the sublane packing; full-extent tiles are always legal.
    rows_by_vmem = max(1, max_tile_bytes // max(tile_d * itemsize, 1))
    tile_r = min(rows_eff, rows_by_vmem)
    if tile_r < rows_eff:
        tile_r = max(sublane, (tile_r // sublane) * sublane)

    # Megacore: v7x has 2 TensorCores. Make sure the grid has >= 2 steps so
    # the "parallel" axes actually shard work (free up-to-2x on v7x).
    if d_blocks * pl.cdiv(rows_eff, tile_r) < 2 and rows_eff >= 2 * sublane:
        tile_r = _round_up(pl.cdiv(rows_eff, 2), sublane)

    r_blocks = pl.cdiv(rows_eff, tile_r)
    grid = (r_blocks, d_blocks)

    # Explicit scoped-VMEM limit: x + out double-buffered, plus params and
    # compiler scratch headroom. Never rely on the per-chip default (16 MiB
    # on v5e would collide with an 8 MiB/tile budget).
    tile_bytes = tile_r * tile_d * itemsize
    needed = 4 * tile_bytes + 4 * tile_d * itemsize + (2 << 20)
    vmem_limit = int(max(vmem_limit_bytes, needed))

    cost = pl.CostEstimate(
        flops=2 * rows * D,
        bytes_accessed=2 * rows * D * itemsize + 2 * D * itemsize,
        transcendentals=0,
    )

    out2 = pl.pallas_call(
        affine_kernel,
        out_shape=jax.ShapeDtypeStruct((rows_eff, d_eff), x.dtype),
        grid=grid,
        in_specs=[
            # streaming row tiles of x
            pl.BlockSpec((tile_r, tile_d), lambda i, j: (i, j)),
            # params: constant row-block index -> fetched once per D-block,
            # reused across all row steps
            pl.BlockSpec((1, tile_d), lambda i, j: (0, j)),
            pl.BlockSpec((1, tile_d), lambda i, j: (0, j)),
        ],
        out_specs=pl.BlockSpec((tile_r, tile_d), lambda i, j: (i, j)),
        compiler_params=pltpu.CompilerParams(
            dimension_semantics=("parallel", "parallel"),
            vmem_limit_bytes=vmem_limit,
        ),
        cost_estimate=cost,
    )(x2, g2, b2)

    return out2.reshape(B, N, D)


if __name__ == "__main__":
    B, N, D = 2, 8, 128  # small (batch, seq, dim) consistent with the module

    key = jax.random.PRNGKey(0)
    kx, kg, kb = jax.random.split(key, 3)

    x = jax.random.normal(kx, (B, N, D), dtype=jnp.float32)
    # Module inits g=ones, b=zeros; perturb deterministically so both terms
    # are actually exercised.
    g = jnp.ones((1, 1, D), jnp.float32) + 0.01 * jax.random.normal(kg, (1, 1, D))
    b = jnp.zeros((1, 1, D), jnp.float32) + 0.01 * jax.random.normal(kb, (1, 1, D))

    out = affine(x, g, b)
    out = jax.block_until_ready(out)

    # Pure-JAX reference check.
    ref = x * g + b
    assert out.shape == (B, N, D)
    assert out.dtype == x.dtype
    assert jnp.allclose(out, ref, atol=1e-6, rtol=1e-6)

    print("KERNEL_OK")
</pallas_src>

<mosaic_0001>
module attributes {stable_mosaic.version = 11 : i64} {
  func.func @affine_kernel(%arg0: i32, %arg1: i32, %arg2: memref<8x128xf32, #tpu.memory_space<vmem>>, %arg3: memref<1x128xf32, #tpu.memory_space<vmem>>, %arg4: memref<1x128xf32, #tpu.memory_space<vmem>>, %arg5: memref<8x128xf32, #tpu.memory_space<vmem>>) attributes {dimension_semantics = [#tpu.dimension_semantics<parallel>, #tpu.dimension_semantics<parallel>], iteration_bounds = array<i64: 2, 1>, scalar_prefetch = 0 : i64, scratch_operands = 0 : i64, tpu.core_type = #tpu.core_type<tc>, window_params = [{transform_indices = @transform_0, window_bounds = array<i64: 8, 128>}, {transform_indices = @transform_1, window_bounds = array<i64: 1, 128>}, {transform_indices = @transform_2, window_bounds = array<i64: 1, 128>}, {transform_indices = @transform_3, window_bounds = array<i64: 8, 128>}]} {
    %c0 = arith.constant 0 : index
    %c0_0 = arith.constant 0 : index
    %0 = vector.load %arg2[%c0, %c0_0] : memref<8x128xf32, #tpu.memory_space<vmem>>, vector<8x128xf32>
    %c0_1 = arith.constant 0 : index
    %c0_2 = arith.constant 0 : index
    %1 = vector.load %arg3[%c0_1, %c0_2] : memref<1x128xf32, #tpu.memory_space<vmem>>, vector<1x128xf32>
    %2 = vector.broadcast %1 : vector<1x128xf32> to vector<8x128xf32>
    %3 = arith.mulf %0, %2 : vector<8x128xf32>
    %c0_3 = arith.constant 0 : index
    %c0_4 = arith.constant 0 : index
    %4 = vector.load %arg4[%c0_3, %c0_4] : memref<1x128xf32, #tpu.memory_space<vmem>>, vector<1x128xf32>
    %5 = vector.broadcast %4 : vector<1x128xf32> to vector<8x128xf32>
    %6 = arith.addf %3, %5 : vector<8x128xf32>
    %c0_5 = arith.constant 0 : index
    %c0_6 = arith.constant 0 : index
    %7 = vector.load %arg5[%c0_5, %c0_6] : memref<8x128xf32, #tpu.memory_space<vmem>>, vector<8x128xf32>
    tpu.vector_store %arg5[%c0_5, %c0_6], %6 {strides = array<i32>} : memref<8x128xf32, #tpu.memory_space<vmem>>, vector<8x128xf32>,
    return
  }
  func.func @transform_0(%arg0: i32, %arg1: i32) -> (i32, i32) {
    %c0_i32 = arith.constant 0 : i32
    return %arg0, %arg1 : i32, i32
  }
  func.func @transform_1(%arg0: i32, %arg1: i32) -> (i32, i32) {
    %c0_i32 = arith.constant 0 : i32
    %c0_i32_0 = arith.constant 0 : i32
    return %c0_i32, %arg1 : i32, i32
  }
  func.func @transform_2(%arg0: i32, %arg1: i32) -> (i32, i32) {
    %c0_i32 = arith.constant 0 : i32
    %c0_i32_0 = arith.constant 0 : i32
    return %c0_i32, %arg1 : i32, i32
  }
  func.func @transform_3(%arg0: i32, %arg1: i32) -> (i32, i32) {
    %c0_i32 = arith.constant 0 : i32
    return %arg0, %arg1 : i32, i32
  }
}

</mosaic_0001>

<bundles_post_ra>
// kernel: tpu_custom_call.1
= control target key start
LH: loop header
LB: loop body
LE: loop exit
PB: predicated region body
PF: predicated region fallthrough
CT: control target
= control target key end

     0   :  { %8 = vsyncpa [#allocation3], 0  ;;  %s761_s0 = inlined_call_operand.hbm [shape: f32[16,128], index: 0, kind: input, shape index: {}]   ;;  %s762_s1 = inlined_call_operand.vmem [shape: f32[1,128], index: 1, kind: input, shape index: {}]   ;;  %s763_s2 = inlined_call_operand.vmem [shape: f32[1,128], index: 2, kind: input, shape index: {}]   ;;  %s764_s3 = inlined_call_operand.hbm [shape: f32[16,128], index: 3, kind: output, shape index: {}]  }
   0x1   :  { %10 = vsyncpa [#allocation3 + $0x1], 0 }
   0x2   :  { %11 = vsyncpa [#allocation4], 0 }
   0x3   :  { %13 = vsyncpa [#allocation4 + $0x1], 0  ;;  %s583_s12 = smov 0   ;;  %s585_s13 = smov 0  }
   0x4   :  { %s587_s14 = smov 0   ;;  %s589_s15 = smov 0  }
   0x5   :  { %s591_s16 = smov 0   ;;  %s593_s17 = smov 0  }
   0x6 LB: > { %s368_s18 = sadd.s32 4294967295, %s559_s17   ;;  %s369_s19 = sadd.s32 4294967294, %s559_s17   ;;  %s559_s17 = sphi %s593_s17, %s19_s17   ;;  %s555_s16 = sphi %s591_s16, %s780_s16   ;;  %s551_s15 = sphi %s589_s15, %s779_s15   ;;  %s547_s14 = sphi %s587_s14, %s778_s14   ;;  %s543_s13 = sphi %s585_s13, %s777_s13   ;;  %s539_s12 = sphi %s583_s12, %s776_s12  }
   0x7   : > { %s31_s20 = sadd.s32 1, %s555_s16  ;;  %s40_s21 = sadd.s32 1, %s547_s14 }
   0x8   : > { %p33_p0 = scmp.ge.s32.totalorder %s31_s20, 2  ;;  %p47_p1 = scmp.ne.s32.totalorder %s547_s14, %s543_s13 }
   0x9   : > { %p48_p2 = scmp.eq.s32.totalorder %s559_s17, 0  ;;  %p53_p3 = scmp.ne.s32.totalorder %s543_s13, %s539_s12 }
   0xa   : > { %s782_s20 = smov (%p33_p0, %s31_s20), 0  ;;  %p54_p5 = scmp.eq.s32.totalorder %s368_s18, 0 }
   0xb   : > { %p624_p4 = por %p48_p2, %p47_p1  ;;  %s35_s23 = ssub.s32 %s555_s16, %s782_s20 }
   0xc   : > { %p131_p6 = scmp.eq.s32.totalorder %s368_s18, 1  ;;  %p38_p7 = scmp.eq.s32.totalorder %s35_s23, 0 }
   0xd   : > { %p630_p8 = por %p54_p5, %p53_p3  ;;  %p137_p10 = scmp.eq.s32.totalorder %s369_s19, 1 }
   0xe   : > { %p634_p9 = por %p131_p6, %p47_p1  ;;  %p397_p13 = scmp.lt.s32.totalorder %s559_s17, 2 }
   0xf   : > { %s639_s26 = scalar_select %p38_p7, %s547_s14, %s40_s21  }
  0x10   : > { %s768_s25 = scalar_select %p634_p9, 1, 0 }
  0x11   : > { %p641_p11 = por %p137_p10, %p53_p3  ;;  %s169_s28 = sand.u32 1, %s547_s14  }
  0x12   : > { %s374_s29 = sshll.u32 %s169_s28, 3  ;;  %s375_s30 = sshll.u32 %s555_s16, 7 }
  0x13   : > { %s769_s27 = scalar_select %p641_p11, 1, 0 }
  0x14   : > { %s652_s6 = scalar_lea.hbm %s761_s0, %s375_s30  ;;  %s173_s7 = scalar_lea.vmem [#allocation2], %s374_s29 }
  0x15   : > { %s181_s8 = sshll.u32 %s173_s7, 4  ;;  %p658_p0 = pnand %p397_p13, %p624_p4  ;;  %s654_s8 = int_to_ptr.vmem [resolvable:$true] %s181_s8 }
  0x16   : > { %s170_s10 = scalar_lea.sflag [#allocation3], %s169_s28  ;;  %s447_s11 = scalar_lea.hbm %s652_s6, 128 }
  0x17   : > { %p448_p3 = scmp.ne.s32.totalorder %s652_s6, %s447_s11  ;;  %p449_p5 = pneg %p658_p0 }
  0x18   : > { %s452_s21 = scalar_lea.hbm %s761_s0, 256  ;;  %p453_p4 = scmp.lt.u32.totalorder %s652_s6, %s761_s0 }
  0x19   : > { %p450_p6 = pnand %p449_p5, %p448_p3  ;;  %p454_p10 = scmp.lt.u32.totalorder %s452_s21, %s447_s11 }
  0x1a   : > { %p456_p12 = scmp.lt.u32.totalorder %s447_s11, %s652_s6 }
  0x1b   : > { %p451_p7 = pneg %p450_p6  ;;  %p455_p13 = por %p454_p10, %p453_p4 }
  0x1d   : > { %p457_p1 = por %p456_p12, %p455_p13 }
  0x1f   : > { %p458_p2 = pnand %p457_p1, %p451_p7 }
  0x21   : > { %461 = shalt.err (!%p458_p2)
}
  0x22   : > { %s462_s28 = scalar_lea.vmem %s654_s8, 128  ;;  %s561_s29 = smov [#allocation2]  }
  0x23   : > { %p463_p3 = scmp.ne.s32.totalorder %s654_s8, %s462_s28  ;;  %s467_s30 = sshll.u32 %s561_s29, 4  ;;  %s468_s30 = int_to_ptr.vmem [resolvable:$false] %s467_s30 }
  0x24   : > { %s469_s4 = scalar_lea.vmem %s468_s30, 256  ;;  %p470_p9 = scmp.lt.s32.totalorder %s654_s8, %s468_s30 }
  0x25   : > { %p465_p6 = pnand %p463_p3, %p449_p5  ;;  %p471_p4 = scmp.lt.s32.totalorder %s469_s4, %s462_s28 }
  0x27   : > { %p466_p11 = pneg %p465_p6  ;;  %p472_p10 = por %p471_p4, %p470_p9 }
  0x29   : > { %p473_p12 = pnand %p472_p10, %p466_p11 }
  0x2b   : > { %476 = shalt.err (!%p473_p12)
}
  0x2c   : > { %392 = dma.hbm_to_vmem [thread:$0]  (!%p658_p0), %s652_s6, 128, %s654_s8, %s170_s10  }
  0x2d   : > { %p771_p1 = scmp.lt.s32.totalorder %s559_s17, 3  ;;  %p772_p2 = scmp.ge.s32.totalorder %s559_s17, 1 }
  0x2f   : > { %p187_p5 = pnand %p772_p2, %p771_p1 }
  0x30   : > { %s694_s5 = sand.u32 (!%p187_p5), 1, %s543_s13  }
  0x31   : > { %190 = sbr.rel (%p187_p5) target bundleno = 83 (0x53), region = 32  ;;  %s377_s7 = sshll.u32 (!%p187_p5), %s694_s5, 3 }
  0x32   : > { %s193_s11 = scalar_lea.sflag (!%p187_p5), [#allocation3], %s694_s5  ;;  %s196_s18 = scalar_lea.vmem (!%p187_p5), [#allocation2], %s377_s7 }
  0x38   : > { %530 = dma.done.wait (%p630_p8), %s193_s11, 128  }
  0x39   : > { %532 = vsyncadd (%p630_p8), %s193_s11, 4294967168  ;;  %s224_s6 = scalar_lea.vmem [#allocation5], %s377_s7  ;;  %v231_v0 = vld [vmem:[%s196_s18] sm:$0xff]  ;;  %s382_s22 = sshll.u32 %s551_s15, 7 }
  0x3a   : > { %s264_s8 = sshll.u32 %s224_s6, 4  ;;  %v379_v1 = vld [vmem:[%s762_s1] ss:$0 sm:$0xff]  ;;  %s714_s28 = scalar_lea.hbm %s764_s3, %s382_s22  ;;  %s709_s8 = int_to_ptr.vmem [resolvable:$true] %s264_s8 }
  0x3b   : > { %v380_v2 = vld [vmem:[%s763_s2] ss:$0 sm:$0xff]  ;;  %v239_v3 = vmul.f32 %v379_v1, %v231_v0  ;;  %s250_s29 = scalar_lea.sflag [#allocation4], %s694_s5  ;;  %s477_s30 = scalar_lea.vmem %s709_s8, 128 }
  0x3c   : > { %p478_p8 = scmp.ne.s32.totalorder %s709_s8, %s477_s30  ;;  %p773_p9 = scmp.ne.s32.totalorder %s768_s25, 0 }
  0x3d   : > { %v247_v4 = vadd.f32 %v380_v2, %v239_v3  ;;  %s562_s15 = smov [#allocation5]  }
  0x3e   : > { %p479_p11 = pnand %p478_p8, %p773_p9  ;;  %s481_s4 = sshll.u32 %s562_s15, 4  ;;  %s482_s4 = int_to_ptr.vmem [resolvable:$false] %s481_s4 }
  0x3f   : > { %248 = vst [vmem:[%s224_s6] sm:$0xff] %v247_v4  ;;  %s483_s7 = scalar_lea.vmem %s482_s4, 256  ;;  %p484_p7 = scmp.lt.s32.totalorder %s709_s8, %s482_s4 }
  0x40   : > { %p480_p0 = pneg %p479_p11  ;;  %p485_p13 = scmp.lt.s32.totalorder %s483_s7, %s477_s30 }
  0x42   : > { %p486_p3 = por %p485_p13, %p484_p7 }
  0x44   : > { %p487_p6 = pnand %p486_p3, %p480_p0 }
  0x46   : > { %490 = shalt.err (!%p487_p6)
}
  0x47   : > { %s491_s5 = scalar_lea.hbm %s714_s28, 128  ;;  %s495_s6 = scalar_lea.hbm %s764_s3, 256 }
  0x48   : > { %p492_p4 = scmp.ne.s32.totalorder %s714_s28, %s491_s5  ;;  %p496_p1 = scmp.lt.u32.totalorder %s714_s28, %s764_s3 }
  0x49   : > { %p497_p2 = scmp.lt.u32.totalorder %s495_s6, %s491_s5  ;;  %p499_p8 = scmp.lt.u32.totalorder %s491_s5, %s714_s28 }
  0x4a   : > { %p493_p10 = pnand %p492_p4, %p773_p9 }
  0x4b   : > { %p498_p5 = por %p497_p2, %p496_p1 }
  0x4c   : > { %p494_p12 = pneg %p493_p10 }
  0x4d   : > { %p500_p11 = por %p499_p8, %p498_p5 }
  0x4f   : > { %p501_p0 = pnand %p500_p11, %p494_p12 }
  0x51   : > { %504 = shalt.err (!%p501_p0)
}
  0x52   : > { %387 = dma.vmem_to_hbm [thread:$0]  (%p773_p9), %s709_s8, 128, %s714_s28, %s250_s29  }
  0x53 PF: > { %s276_s19 = sand.u32 1, %s539_s12   ;;  %p774_p7 = scmp.ne.s32.totalorder %s769_s27, 0 }
  0x54   : > { %p775_p13 = scmp.ge.s32.totalorder %s559_s17, 2  ;;  %s277_s21 = scalar_lea.sflag [#allocation4], %s276_s19 }
  0x56   : > { %p394_p3 = pnand %p775_p13, %p774_p7 }
  0x58   : > { %534 = dma.done.wait (!%p394_p3), %s277_s21, 128  }
  0x59   : > { %536 = vsyncadd (!%p394_p3), %s277_s21, 4294967168  ;;  %s19_s17 = sadd.s32 1, %s559_s17   ;;  %s776_s12 = smov %s543_s13 }
  0x5a   : > { %p16_p6 = scmp.ge.s32.totalorder %s19_s17, 4   ;;  %s777_s13 = smov %s547_s14 }
  0x5b   : > { %s778_s14 = smov %s639_s26  ;;  %s779_s15 = smov %s555_s16 }
  0x5c   : > { %s780_s16 = smov %s782_s20  ;;  %18 = sbr.rel (!%p16_p6) target bundleno = 6 (0x6), region = 83 }
  0x63   :  { %282 = vsyncpa [#allocation3], 1 }
  0x64   :  { %284 = vsyncpa [#allocation3 + $0x1], 1 }
  0x65   :  { %285 = vsyncpa [#allocation4], 1 }
  0x66   :  { %287 = vsyncpa [#allocation4 + $0x1], 1 }

</bundles_post_ra>
